<compile_context>
chip_gen: v6e
topology: v6e:2x2x1
jax: 0.10.0
libtpu: 0.0.40
codegen_flags: <defaults>
</compile_context>

<pallas_src>
import functools
import math

import jax
import jax.numpy as jnp
from jax.experimental import pallas as pl
from jax.experimental.pallas import tpu as pltpu


# ----------------------------------------------------------------------------
# Kernel A: src-side projection (runs once; reused by every dst tile).
# ----------------------------------------------------------------------------
def _src_project_kernel(hs_ref, wt_ref, wb_ref, asrc_ref, whs_ref, esrc_ref):
    # Wh_src = h_src @ W^T + b   (bf16 MXU operands, f32 accumulation)
    wh = jnp.dot(hs_ref[...], wt_ref[...],
                 preferred_element_type=jnp.float32) + wb_ref[...]
    # e_src[j] = a_src · Wh_src[j], laid out as a (1, tile_s) row for kernel B.
    esrc_ref[...] = jax.lax.dot_general(
        asrc_ref[...], wh, (((1,), (1,)), ((), ())),
        preferred_element_type=jnp.float32)
    whs_ref[...] = wh.astype(whs_ref.dtype)


# ----------------------------------------------------------------------------
# Kernel B: masked attention + aggregation, online softmax over src tiles.
# ----------------------------------------------------------------------------
def _gat_attn_kernel(hd_ref, wadst_ref, whs_ref, esrc_ref, adj_ref, out_ref,
                     ed_sc, m_sc, l_sc, acc_sc, *, alpha):
    si = pl.program_id(1)

    @pl.when(si == 0)
    def _init():
        m_sc[...] = jnp.full_like(m_sc, -jnp.inf)
        l_sc[...] = jnp.zeros_like(l_sc)
        acc_sc[...] = jnp.zeros_like(acc_sc)
        # e_dst_raw[i] = <h_dst[i], (a_dst W)>; the "+ a_dst·b + a_b" constant
        # is folded into e_src by the wrapper.  Computed once per dst tile.
        hd = hd_ref[...].astype(jnp.float32)
        ed_sc[...] = jnp.sum(hd * wadst_ref[...], axis=-1, keepdims=True)

    # Scores for this (dst tile, src tile), f32.
    e = ed_sc[...] + esrc_ref[...]                         # (tile_d, tile_s)
    e = jnp.maximum(e, alpha * e)                          # LeakyReLU
    mask = adj_ref[...] > 0
    e = jnp.where(mask, e, jnp.float32(-1e30))

    # Online (flash-style) softmax over the src (mailbox) dimension.
    m_new = jnp.maximum(m_sc[...], jnp.max(e, axis=-1, keepdims=True))
    scale = jnp.exp(m_sc[...] - m_new)
    p = jnp.exp(e - m_new)
    p = jnp.where(mask, p, jnp.float32(0.0))               # exact zeros for masked/padded
    l_sc[...] = scale * l_sc[...] + jnp.sum(p, axis=-1, keepdims=True)
    acc_sc[...] = scale * acc_sc[...] + jnp.dot(
        p.astype(jnp.bfloat16), whs_ref[...], preferred_element_type=jnp.float32)
    m_sc[...] = m_new

    @pl.when(si == pl.num_programs(1) - 1)
    def _finalize():
        l = l_sc[...]
        inv = pl.reciprocal(l, approx=True)
        inv = jnp.where(l > 0, inv, jnp.float32(0.0))      # dst with no in-edges -> 0
        out_ref[...] = (acc_sc[...] * inv).astype(out_ref.dtype)


# ----------------------------------------------------------------------------
# Wrapper
# ----------------------------------------------------------------------------
def _round_up(x, m):
    return ((x + m - 1) // m) * m


def _pad2(x, rows, cols):
    return jnp.pad(x, ((0, rows - x.shape[0]), (0, cols - x.shape[1])))


def directed_gat_inversed(h_src, h_dst, W, b, a_w, a_b, adj, *, alpha=0.2,
                          block_d=256, block_s=512):
    """h_src: (Ns, Fin), h_dst: (Nd, Fin), W: (Fout, Fin), b: (Fout,),
       a_w: (1, 2*Fout), a_b: (1,), adj: (Nd, Ns) 0/1 mask.
       Returns h_prime: (Nd, Fout) float32."""
    assert block_d % 32 == 0 and block_s % 128 == 0
    Ns, Fin = h_src.shape
    Nd = h_dst.shape[0]
    Fout = W.shape[0]

    # ---- parameter prep (pure XLA, runs once) ----
    W = jnp.asarray(W, jnp.float32)
    b = jnp.asarray(b, jnp.float32)
    a_w = jnp.asarray(a_w, jnp.float32)
    a_b = jnp.asarray(a_b, jnp.float32)

    a_src = a_w[:, :Fout]                        # (1, Fout)
    a_dst = a_w[:, Fout:]                        # (1, Fout)
    w_adst_row = a_dst @ W                       # (1, Fin): a_dst folded into W
    e_const = jnp.sum(a_dst[0] * b) + a_b[0]     # a_dst·b + a_b

    # ---- padding to TPU-friendly, lane-dense shapes ----
    Fin_p = _round_up(Fin, 128)
    Fout_p = _round_up(Fout, 128)
    tile_s = min(block_s, _round_up(Ns, 128))
    Ns_p = _round_up(Ns, tile_s)
    tile_d = min(block_d, _round_up(Nd, 32))
    Nd_p = _round_up(Nd, tile_d)
    grid_s = Ns_p // tile_s
    grid_d = Nd_p // tile_d

    hs = _pad2(jnp.asarray(h_src, jnp.float32), Ns_p, Fin_p).astype(jnp.bfloat16)
    hd = _pad2(jnp.asarray(h_dst, jnp.float32), Nd_p, Fin_p).astype(jnp.bfloat16)
    wt = _pad2(W.T, Fin_p, Fout_p).astype(jnp.bfloat16)       # (Fin_p, Fout_p)
    wb = _pad2(b.reshape(1, Fout), 1, Fout_p)                 # f32
    asrc = _pad2(a_src, 1, Fout_p)                            # f32
    wadst = _pad2(w_adst_row, 1, Fin_p)                       # f32
    adj_i8 = _pad2((jnp.asarray(adj) > 0).astype(jnp.int8), Nd_p, Ns_p)

    # ---- kernel A: src projection + src half of the attention score ----
    wh_src, e_src = pl.pallas_call(
        _src_project_kernel,
        grid=(grid_s,),
        in_specs=[
            pl.BlockSpec((tile_s, Fin_p), lambda i: (i, 0)),    # h_src
            pl.BlockSpec((Fin_p, Fout_p), lambda i: (0, 0)),    # W^T
            pl.BlockSpec((1, Fout_p), lambda i: (0, 0)),        # b
            pl.BlockSpec((1, Fout_p), lambda i: (0, 0)),        # a_src
        ],
        out_specs=[
            pl.BlockSpec((tile_s, Fout_p), lambda i: (i, 0)),   # Wh_src (bf16)
            pl.BlockSpec((1, tile_s), lambda i: (0, i)),        # e_src (f32)
        ],
        out_shape=[
            jax.ShapeDtypeStruct((Ns_p, Fout_p), jnp.bfloat16),
            jax.ShapeDtypeStruct((1, Ns_p), jnp.float32),
        ],
        compiler_params=pltpu.CompilerParams(dimension_semantics=("parallel",)),
    )(hs, wt, wb, asrc)

    # Fold the constant dst-score term (a_dst·b + a_b) into e_src (tiny XLA op).
    e_src = e_src + e_const

    # ---- kernel B: masked softmax attention + aggregation ----
    out_p = pl.pallas_call(
        functools.partial(_gat_attn_kernel, alpha=float(alpha)),
        grid=(grid_d, grid_s),
        in_specs=[
            pl.BlockSpec((tile_d, Fin_p), lambda di, si: (di, 0)),    # h_dst
            pl.BlockSpec((1, Fin_p), lambda di, si: (0, 0)),          # a_dst W
            pl.BlockSpec((tile_s, Fout_p), lambda di, si: (si, 0)),   # Wh_src
            pl.BlockSpec((1, tile_s), lambda di, si: (0, si)),        # e_src
            pl.BlockSpec((tile_d, tile_s), lambda di, si: (di, si)),  # adjacency
        ],
        out_specs=pl.BlockSpec((tile_d, Fout_p), lambda di, si: (di, 0)),
        out_shape=jax.ShapeDtypeStruct((Nd_p, Fout_p), jnp.float32),
        scratch_shapes=[
            pltpu.VMEM((tile_d, 1), jnp.float32),       # e_dst_raw
            pltpu.VMEM((tile_d, 1), jnp.float32),       # running max
            pltpu.VMEM((tile_d, 1), jnp.float32),       # running denominator
            pltpu.VMEM((tile_d, Fout_p), jnp.float32),  # running numerator
        ],
        compiler_params=pltpu.CompilerParams(
            dimension_semantics=("parallel", "arbitrary")),
    )(hd, wadst, wh_src, e_src, adj_i8)

    return out_p[:Nd, :Fout]


# ----------------------------------------------------------------------------
# Deterministic init mirroring the module's __init__ + a pure-JAX reference.
# ----------------------------------------------------------------------------
def _xavier_uniform(key, shape, gain):
    fan_out, fan_in = shape
    bound = gain * math.sqrt(6.0 / (fan_in + fan_out))
    return jax.random.uniform(key, shape, jnp.float32, -bound, bound)


def _linear_bias(key, fan_in, fan_out):
    bound = 1.0 / math.sqrt(fan_in)
    return jax.random.uniform(key, (fan_out,), jnp.float32, -bound, bound)


def _reference(h_src, h_dst, W, b, a_w, a_b, adj, alpha):
    # Mirror the kernel's bf16 MXU operands so the comparison isolates kernel
    # bugs from expected bf16 rounding; accumulation/softmax stay f32.
    r = lambda x: x.astype(jnp.bfloat16).astype(jnp.float32)
    h_src, h_dst, W = r(h_src), r(h_dst), r(W)
    Fout = W.shape[0]
    wh_src = h_src @ W.T + b
    wh_dst = h_dst @ W.T + b
    a_src, a_dst = a_w[:, :Fout], a_w[:, Fout:]
    e = (wh_dst @ a_dst.T) + (wh_src @ a_src.T).T + a_b[0]
    e = jnp.where(e >= 0, e, alpha * e)
    mask = adj > 0
    e = jnp.where(mask, e, -1e30)
    p = jnp.exp(e - jnp.max(e, axis=-1, keepdims=True))
    p = jnp.where(mask, p, 0.0)
    attn = p / jnp.sum(p, axis=-1, keepdims=True)
    return attn @ wh_src


if __name__ == "__main__":
    in_features = 32
    out_features = 32   # module keeps out_features = in_features
    alpha = 0.2

    key = jax.random.PRNGKey(0)
    k_w, k_wb, k_a, k_ab, k_hs, k_hd, k_hs2, k_hd2, k_adj = jax.random.split(key, 9)

    W = _xavier_uniform(k_w, (out_features, in_features), gain=1.414)
    b = _linear_bias(k_wb, in_features, out_features)
    a_w = _xavier_uniform(k_a, (1, 2 * out_features), gain=1.414)
    a_b = _linear_bias(k_ab, 2 * out_features, 1)

    # --- test 1: small fully-connected bipartite turn graph (module-sized) ---
    n_src, n_dst = 8, 8
    h_src = jax.random.normal(k_hs, (n_src, in_features), jnp.float32)
    h_dst = jax.random.normal(k_hd, (n_dst, in_features), jnp.float32)
    adj = jnp.ones((n_dst, n_src), jnp.float32)

    out1 = jax.block_until_ready(
        directed_gat_inversed(h_src, h_dst, W, b, a_w, a_b, adj, alpha=alpha))
    ref1 = _reference(h_src, h_dst, W, b, a_w, a_b, adj, alpha)
    assert out1.shape == (n_dst, out_features)
    assert jnp.allclose(out1, ref1, atol=3e-2, rtol=3e-2)

    # --- test 2: ragged sizes + sparse mask, multi-tile grid (4 x 3 tiles) ---
    n_src2, n_dst2 = 300, 200
    h_src2 = jax.random.normal(k_hs2, (n_src2, in_features), jnp.float32)
    h_dst2 = jax.random.normal(k_hd2, (n_dst2, in_features), jnp.float32)
    adj2 = (jax.random.uniform(k_adj, (n_dst2, n_src2)) < 0.3)
    adj2 = adj2.at[:, 0].set(True).astype(jnp.float32)   # every dst has >=1 edge

    out2 = jax.block_until_ready(
        directed_gat_inversed(h_src2, h_dst2, W, b, a_w, a_b, adj2,
                              alpha=alpha, block_d=64, block_s=128))
    ref2 = _reference(h_src2, h_dst2, W, b, a_w, a_b, adj2, alpha)
    assert out2.shape == (n_dst2, out_features)
    assert jnp.allclose(out2, ref2, atol=3e-2, rtol=3e-2)

    print("KERNEL_OK")
</pallas_src>

<mosaic_0001>
module attributes {stable_mosaic.version = 11 : i64} {
  func.func @_src_project_kernel(%arg0: i32, %arg1: memref<128x128xbf16, #tpu.memory_space<vmem>>, %arg2: memref<128x128xbf16, #tpu.memory_space<vmem>>, %arg3: memref<1x128xf32, #tpu.memory_space<vmem>>, %arg4: memref<1x128xf32, #tpu.memory_space<vmem>>, %arg5: memref<128x128xbf16, #tpu.memory_space<vmem>>, %arg6: memref<1x128xf32, #tpu.memory_space<vmem>>) attributes {dimension_semantics = [#tpu.dimension_semantics<parallel>], iteration_bounds = array<i64: 1>, scalar_prefetch = 0 : i64, scratch_operands = 0 : i64, tpu.core_type = #tpu.core_type<tc>, window_params = [{transform_indices = @transform_0, window_bounds = array<i64: 128, 128>}, {pipeline_mode = #tpu.pipeline_mode<synchronous>, transform_indices = @transform_1, window_bounds = array<i64: 128, 128>}, {pipeline_mode = #tpu.pipeline_mode<synchronous>, transform_indices = @transform_2, window_bounds = array<i64: 1, 128>}, {pipeline_mode = #tpu.pipeline_mode<synchronous>, transform_indices = @transform_3, window_bounds = array<i64: 1, 128>}, {transform_indices = @transform_4, window_bounds = array<i64: 128, 128>}, {transform_indices = @transform_5, window_bounds = array<i64: 1, 128>}]} {
    %c0 = arith.constant 0 : index
    %c0_0 = arith.constant 0 : index
    %0 = vector.load %arg1[%c0, %c0_0] : memref<128x128xbf16, #tpu.memory_space<vmem>>, vector<128x128xbf16>
    %c0_1 = arith.constant 0 : index
    %c0_2 = arith.constant 0 : index
    %1 = vector.load %arg2[%c0_1, %c0_2] : memref<128x128xbf16, #tpu.memory_space<vmem>>, vector<128x128xbf16>
    %cst = arith.constant dense<0.000000e+00> : vector<128x128xf32>
    %2 = tpu.matmul %0, %1, %cst {dimension_numbers = #tpu.dot_dimension_numbers<[1], [0], [0], [1], [0, 0, 1, 1], [], []>} : vector<128x128xbf16>, vector<128x128xbf16>, vector<128x128xf32> -> vector<128x128xf32>
    %c0_3 = arith.constant 0 : index
    %c0_4 = arith.constant 0 : index
    %3 = vector.load %arg3[%c0_3, %c0_4] : memref<1x128xf32, #tpu.memory_space<vmem>>, vector<1x128xf32>
    %4 = vector.broadcast %3 : vector<1x128xf32> to vector<128x128xf32>
    %5 = arith.addf %2, %4 : vector<128x128xf32>
    %c0_5 = arith.constant 0 : index
    %c0_6 = arith.constant 0 : index
    %6 = vector.load %arg4[%c0_5, %c0_6] : memref<1x128xf32, #tpu.memory_space<vmem>>, vector<1x128xf32>
    %cst_7 = arith.constant dense<0.000000e+00> : vector<1x128xf32>
    %7 = tpu.matmul %6, %5, %cst_7 {dimension_numbers = #tpu.dot_dimension_numbers<[1], [1], [0], [0], [0, 0, 1, 0], [], []>} : vector<1x128xf32>, vector<128x128xf32>, vector<1x128xf32> -> vector<1x128xf32>
    %c0_8 = arith.constant 0 : index
    %c0_9 = arith.constant 0 : index
    %8 = vector.load %arg6[%c0_8, %c0_9] : memref<1x128xf32, #tpu.memory_space<vmem>>, vector<1x128xf32>
    tpu.vector_store %arg6[%c0_8, %c0_9], %7 {strides = array<i32>} : memref<1x128xf32, #tpu.memory_space<vmem>>, vector<1x128xf32>,
    %9 = arith.truncf %5 : vector<128x128xf32> to vector<128x128xbf16>
    %c0_10 = arith.constant 0 : index
    %c0_11 = arith.constant 0 : index
    %10 = vector.load %arg5[%c0_10, %c0_11] : memref<128x128xbf16, #tpu.memory_space<vmem>>, vector<128x128xbf16>
    tpu.vector_store %arg5[%c0_10, %c0_11], %9 {strides = array<i32>} : memref<128x128xbf16, #tpu.memory_space<vmem>>, vector<128x128xbf16>,
    return
  }
  func.func @transform_0(%arg0: i32) -> (i32, i32) {
    %c0_i32 = arith.constant 0 : i32
    %c0_i32_0 = arith.constant 0 : i32
    return %arg0, %c0_i32 : i32, i32
  }
  func.func @transform_1(%arg0: i32) -> (i32, i32) {
    %c0_i32 = arith.constant 0 : i32
    %c0_i32_0 = arith.constant 0 : i32
    %c0_i32_1 = arith.constant 0 : i32
    return %c0_i32, %c0_i32_0 : i32, i32
  }
  func.func @transform_2(%arg0: i32) -> (i32, i32) {
    %c0_i32 = arith.constant 0 : i32
    %c0_i32_0 = arith.constant 0 : i32
    %c0_i32_1 = arith.constant 0 : i32
    return %c0_i32, %c0_i32_0 : i32, i32
  }
  func.func @transform_3(%arg0: i32) -> (i32, i32) {
    %c0_i32 = arith.constant 0 : i32
    %c0_i32_0 = arith.constant 0 : i32
    %c0_i32_1 = arith.constant 0 : i32
    return %c0_i32, %c0_i32_0 : i32, i32
  }
  func.func @transform_4(%arg0: i32) -> (i32, i32) {
    %c0_i32 = arith.constant 0 : i32
    %c0_i32_0 = arith.constant 0 : i32
    return %arg0, %c0_i32 : i32, i32
  }
  func.func @transform_5(%arg0: i32) -> (i32, i32) {
    %c0_i32 = arith.constant 0 : i32
    %c0_i32_0 = arith.constant 0 : i32
    return %c0_i32, %arg0 : i32, i32
  }
}

</mosaic_0001>

<bundles_post_ra>
// kernel: tpu_custom_call.1
= control target key start
LH: loop header
LB: loop body
LE: loop exit
PB: predicated region body
PF: predicated region fallthrough
CT: control target
= control target key end

     0   :  { %11 = vsyncpa [#allocation3], 0  ;;  %s872_s0 = inlined_call_operand.hbm [shape: bf16[128,128], index: 0, kind: input, shape index: {}]   ;;  %s873_s1 = inlined_call_operand.hbm [shape: bf16[128,128], index: 1, kind: input, shape index: {}]   ;;  %s874_s2 = inlined_call_operand.vmem [shape: f32[1,128], index: 2, kind: input, shape index: {}]   ;;  %s875_s3 = inlined_call_operand.vmem [shape: f32[1,128], index: 3, kind: input, shape index: {}]   ;;  %s876_s4 = inlined_call_operand.hbm [shape: bf16[128,128], index: 4, kind: output, shape index: {0}]   ;;  %s877_s5 = inlined_call_operand.hbm [shape: f32[1,128], index: 5, kind: output, shape index: {1}]  }
   0x1   :  { %12 = vsyncpa [#allocation6], 0 }
   0x2   :  { %13 = vsyncpa [#allocation4], 0 }
   0x3   :  { %14 = vsyncpa [#allocation9], 0  ;;  %s774_s18 = smov [#allocation2]  }
   0x4   :  { %s20_s19 = sshll.u32 %s774_s18, 4  ;;  %s21_s19 = int_to_ptr.vmem [resolvable:$true] %s20_s19 }
   0x5   :  { %s694_s20 = scalar_lea.vmem %s21_s19, 1024  ;;  %p699_p1 = scmp.lt.s32.totalorder %s21_s19, %s21_s19 }
   0x6   :  { %p695_p0 = scmp.ne.s32.totalorder %s21_s19, %s694_s20  ;;  %p700_p2 = scmp.lt.s32.totalorder %s694_s20, %s694_s20 }
   0x8   :  { %p701_p3 = por %p700_p2, %p699_p1 }
   0xa   :  { %p702_p4 = pnand %p701_p3, %p695_p0 }
   0xc   :  { %705 = shalt.err (!%p702_p4)
}
   0xd   :  { %s775_s21 = smov 64   ;;  %s776_s22 = smov 4  }
   0xe   :  { %26 = dma.hbm_to_vmem [thread:$0]  %s872_s0, 1024, %s21_s19, [#allocation3], %s775_s21, %s775_s21, %s776_s22  }
   0xf   :  { %s777_s25 = smov [#allocation5]  }
  0x10   :  { %s32_s26 = sshll.u32 %s777_s25, 4  ;;  %s33_s26 = int_to_ptr.vmem [resolvable:$true] %s32_s26 }
  0x11   :  { %s714_s27 = scalar_lea.vmem %s33_s26, 1024  ;;  %p719_p6 = scmp.lt.s32.totalorder %s33_s26, %s33_s26 }
  0x12   :  { %p715_p5 = scmp.ne.s32.totalorder %s33_s26, %s714_s27  ;;  %p720_p7 = scmp.lt.s32.totalorder %s714_s27, %s714_s27 }
  0x14   :  { %p721_p8 = por %p720_p7, %p719_p6 }
  0x16   :  { %p722_p9 = pnand %p721_p8, %p715_p5 }
  0x18   :  { %725 = shalt.err (!%p722_p9)
}
  0x19   :  { %38 = dma.hbm_to_vmem [thread:$0]  %s873_s1, 1024, %s33_s26, [#allocation6], %s775_s21, %s775_s21, %s776_s22  }
  0x1a   :  { %766 = dma.done.wait [#allocation3], 1024  }
  0x1b   :  { %767 = vsyncadd [#allocation3], 4294966272 }
  0x1c   :  { %768 = dma.done.wait [#allocation6], 1024  }
  0x1d   :  { %769 = vsyncadd [#allocation6], 4294966272  ;;  %v670_v0 = vld [vmem:[#allocation5 + $0x38] sm:$0xff]   ;;  %v671_v1 = vld [vmem:[#allocation5 + $0x30] sm:$0xff]   ;;  %v778_v16 = vmov 0.0   ;;  %vm779_vm0 = vmmov 0  }
  0x1e   :  { %595 = vmatprep.subr.bf16.mxu0 %v670_v0  ;;  %v672_v2 = vld [vmem:[#allocation5 + $0x28] sm:$0xff]   ;;  %v673_v3 = vld [vmem:[#allocation5 + $0x20] sm:$0xff]   ;;  %v674_v5 = vld [vmem:[#allocation5 + $0x18] sm:$0xff]   ;;  %627 = vmatprep.subr.mxu1 %v778_v16  ;;  %s780_s6 = smov [#allocation7]  }
  0x1f   :  { %596 = vmatpush3.bf16.msra.mxu0 %v670_v0  ;;  %v678_v4 = vld [vmem:[#allocation2] sm:$0xff]   ;;  %v675_v6 = vld [vmem:[#allocation5 + $0x10] sm:$0xff]   ;;  %v676_v7 = vld [vmem:[#allocation5 + $0x8] sm:$0xff]   ;;  %659 = vmatprep.mubr.msk.f32.mxu1 %vm779_vm0, %v778_v16  ;;  %s439_s7 = sshll.u32 %s780_s6, 4  ;;  %s440_s7 = int_to_ptr.vmem [resolvable:$true] %s439_s7 }
  0x20   :  { %597 = vmatprep.subr.bf16.mxu0 %v671_v1  ;;  %611 = vmatprep.mubr.bf16.mxu0 %v678_v4  ;;  %v677_v8 = vld [vmem:[#allocation5] sm:$0xff]   ;;  %v679_v9 = vld [vmem:[#allocation2 + $0x8] sm:$0xff]   ;;  %v680_v10 = vld [vmem:[#allocation2 + $0x10] sm:$0xff]   ;;  %s726_s8 = scalar_lea.vmem %s440_s7, 1024  ;;  %p731_p11 = scmp.lt.s32.totalorder %s440_s7, %s440_s7 }
  0x21   :  { %v681_v11 = vld [vmem:[#allocation2 + $0x18] sm:$0xff]   ;;  %v682_v12 = vld [vmem:[#allocation2 + $0x20] sm:$0xff]   ;;  %v683_v13 = vld [vmem:[#allocation2 + $0x28] sm:$0xff]   ;;  %p727_p10 = scmp.ne.s32.totalorder %s440_s7, %s726_s8  ;;  %p732_p12 = scmp.lt.s32.totalorder %s726_s8, %s726_s8 }
  0x22   :  { %v684_v14 = vld [vmem:[#allocation2 + $0x30] sm:$0xff]   ;;  %v685_v15 = vld [vmem:[#allocation2 + $0x38] sm:$0xff]   ;;  %v466_v18 = vld [vmem:[%s874_s2] ss:$0 sm:$0xff] }
  0x23   :  { %598 = vmatpush3.bf16.msra.mxu0 %v671_v1  ;;  %v282_v58 = vld [vmem:[%s875_s3] sm:$0x1]  ;;  %p733_p13 = por %p732_p12, %p731_p11 }
  0x24   :  { %599 = vmatprep.subr.bf16.mxu0 %v672_v2 }
  0x25   :  { %p734_p0 = pnand %p733_p13, %p727_p10 }
  0x27   :  { %600 = vmatpush3.bf16.msra.mxu0 %v672_v2 }
  0x28   :  { %601 = vmatprep.subr.bf16.mxu0 %v673_v3 }
  0x2b   :  { %602 = vmatpush3.bf16.msra.mxu0 %v673_v3 }
  0x2c   :  { %603 = vmatprep.subr.bf16.mxu0 %v674_v5 }
  0x2f   :  { %604 = vmatpush3.bf16.msra.mxu0 %v674_v5 }
  0x30   :  { %605 = vmatprep.subr.bf16.mxu0 %v675_v6 }
  0x33   :  { %606 = vmatpush3.bf16.msra.mxu0 %v675_v6 }
  0x34   :  { %607 = vmatprep.subr.bf16.mxu0 %v676_v7 }
  0x37   :  { %608 = vmatpush3.bf16.msra.mxu0 %v676_v7 }
  0x38   :  { %609 = vmatprep.subr.bf16.mxu0 %v677_v8 }
  0x3b   :  { %610 = vmatpush3.bf16.msra.mxu0 %v677_v8 }
  0x3e   :  { %612 = vmatmul.mubr.bf16.vlgmr.msra.gmra.mxu0 %v679_v9 }
  0x3f   :  { %615 = vmatprep.mubr.bf16.mxu0 %v680_v10 }
  0x46   :  { %616 = vmatmul.mubr.bf16.gmra.mxu0 %v681_v11 }
  0x47   :  { %619 = vmatprep.mubr.bf16.mxu0 %v682_v12 }
  0x4e   :  { %620 = vmatmul.mubr.bf16.gmra.mxu0 %v683_v13 }
  0x4f   :  { %623 = vmatprep.mubr.bf16.mxu0 %v684_v14 }
  0x56   :  { %624 = vmatmul.mubr.bf16.gmra.mxu0 %v685_v15 }
  0xfe   :  { %v613_v17 = vpop.f32.mrf.mxu0 }
  0xff   :  { %v829_v21 = vadd.f32 %v613_v17, %v466_v18 }
 0x100   :  { %v219_v19 = vpop.f32.mrf.mxu0 }
 0x101   :  { %v833_v24 = vadd.f32 %v466_v18, %v219_v19 }
 0x102   :  { %v614_v20 = vpop.f32.mrf.mxu0 }
 0x103   :  { %v831_v22 = vadd.f32 %v614_v20, %v466_v18 }
 0x104   :  { %v222_v23 = vpop.f32.mrf.mxu0 }
 0x105   :  { %v523_v25 = vpack.c.bf16 %v831_v22, %v829_v21  ;;  %v837_v26 = vadd.f32 %v466_v18, %v222_v23 }
 0x106   :  { %v617_v27 = vpop.f32.mrf.mxu0 }
 0x107   :  { %555 = vst [vmem:[#allocation7 + $0x8] sm:$0xff] %v523_v25   ;;  %v518_v28 = vpack.c.bf16 %v837_v26, %v833_v24  ;;  %v244_v31 = vadd.f32 %v617_v27, %v466_v18 }
 0x108   :  { %v235_v29 = vpop.f32.mrf.mxu0 }
 0x109   :  { %519 = vst [vmem:[#allocation7] sm:$0xff] %v518_v28   ;;  %v236_v34 = vadd.f32 %v466_v18, %v235_v29 }
 0x10a   :  { %v618_v30 = vpop.f32.mrf.mxu0 }
 0x10b   :  { %v247_v32 = vadd.f32 %v618_v30, %v466_v18 }
 0x10c   :  { %v238_v33 = vpop.f32.mrf.mxu0 }
 0x10d   :  { %v533_v35 = vpack.c.bf16 %v247_v32, %v244_v31  ;;  %v239_v36 = vadd.f32 %v466_v18, %v238_v33 }
 0x10e   :  { %v621_v37 = vpop.f32.mrf.mxu0 }
 0x10f   :  { %557 = vst [vmem:[#allocation7 + $0x18] sm:$0xff] %v533_v35   ;;  %v528_v38 = vpack.c.bf16 %v239_v36, %v236_v34  ;;  %v260_v41 = vadd.f32 %v621_v37, %v466_v18 }
 0x110   :  { %v251_v39 = vpop.f32.mrf.mxu0 }
 0x111   :  { %556 = vst [vmem:[#allocation7 + $0x10] sm:$0xff] %v528_v38   ;;  %v252_v44 = vadd.f32 %v466_v18, %v251_v39 }
 0x112   :  { %v622_v40 = vpop.f32.mrf.mxu0 }
 0x113   :  { %v263_v42 = vadd.f32 %v622_v40, %v466_v18 }
 0x114   :  { %v254_v43 = vpop.f32.mrf.mxu0 }
 0x115   :  { %v543_v45 = vpack.c.bf16 %v263_v42, %v260_v41  ;;  %v255_v46 = vadd.f32 %v466_v18, %v254_v43 }
 0x116   :  { %v625_v47 = vpop.f32.mrf.mxu0 }
 0x117   :  { %559 = vst [vmem:[#allocation7 + $0x28] sm:$0xff] %v543_v45   ;;  %v538_v48 = vpack.c.bf16 %v255_v46, %v252_v44  ;;  %v276_v51 = vadd.f32 %v625_v47, %v466_v18 }
 0x118   :  { %v267_v49 = vpop.f32.mrf.mxu0 }
 0x119   :  { %558 = vst [vmem:[#allocation7 + $0x20] sm:$0xff] %v538_v48   ;;  %v268_v54 = vadd.f32 %v466_v18, %v267_v49 }
 0x11a   :  { %v626_v50 = vpop.f32.mrf.mxu0 }
 0x11b   :  { %v279_v52 = vadd.f32 %v626_v50, %v466_v18 }
 0x11c   :  { %v270_v53 = vpop.f32.mrf.mxu0 }
 0x11d   :  { %v553_v55 = vpack.c.bf16 %v279_v52, %v276_v51  ;;  %v271_v56 = vadd.f32 %v466_v18, %v270_v53  ;;  %628 = vmatpush3.xpose.msra.mxu1 %v279_v52 }
 0x11e   :  { %629 = vmatprep.subr.mxu1 %v778_v16 }
 0x11f   :  { %561 = vst [vmem:[#allocation7 + $0x38] sm:$0xff] %v553_v55   ;;  %v548_v57 = vpack.c.bf16 %v271_v56, %v268_v54 }
 0x121   :  { %560 = vst [vmem:[#allocation7 + $0x30] sm:$0xff] %v548_v57   ;;  %630 = vmatpush3.xpose.msra.mxu1 %v276_v51 }
 0x122   :  { %631 = vmatprep.subr.mxu1 %v778_v16 }
 0x125   :  { %632 = vmatpush3.xpose.msra.mxu1 %v271_v56 }
 0x126   :  { %633 = vmatprep.subr.mxu1 %v778_v16 }
 0x129   :  { %634 = vmatpush3.xpose.msra.mxu1 %v268_v54 }
 0x12a   :  { %635 = vmatprep.subr.mxu1 %v778_v16 }
 0x12d   :  { %636 = vmatpush3.xpose.msra.mxu1 %v263_v42 }
 0x12e   :  { %637 = vmatprep.subr.mxu1 %v778_v16 }
 0x131   :  { %638 = vmatpush3.xpose.msra.mxu1 %v260_v41 }
 0x132   :  { %639 = vmatprep.subr.mxu1 %v778_v16 }
 0x135   :  { %640 = vmatpush3.xpose.msra.mxu1 %v255_v46 }
 0x136   :  { %641 = vmatprep.subr.mxu1 %v778_v16 }
 0x139   :  { %642 = vmatpush3.xpose.msra.mxu1 %v252_v44 }
 0x13a   :  { %643 = vmatprep.subr.mxu1 %v778_v16 }
 0x13d   :  { %644 = vmatpush3.xpose.msra.mxu1 %v247_v32 }
 0x13e   :  { %645 = vmatprep.subr.mxu1 %v778_v16 }
 0x141   :  { %646 = vmatpush3.xpose.msra.mxu1 %v244_v31 }
 0x142   :  { %647 = vmatprep.subr.mxu1 %v778_v16 }
 0x145   :  { %648 = vmatpush3.xpose.msra.mxu1 %v239_v36 }
 0x146   :  { %649 = vmatprep.subr.mxu1 %v778_v16 }
 0x149   :  { %650 = vmatpush3.xpose.msra.mxu1 %v236_v34 }
 0x14a   :  { %651 = vmatprep.subr.mxu1 %v778_v16 }
 0x14d   :  { %652 = vmatpush3.xpose.msra.mxu1 %v831_v22 }
 0x14e   :  { %653 = vmatprep.subr.mxu1 %v778_v16 }
 0x151   :  { %654 = vmatpush3.xpose.msra.mxu1 %v829_v21 }
 0x152   :  { %655 = vmatprep.subr.mxu1 %v778_v16 }
 0x155   :  { %656 = vmatpush3.xpose.msra.mxu1 %v837_v26 }
 0x156   :  { %657 = vmatprep.subr.mxu1 %v778_v16 }
 0x159   :  { %658 = vmatpush3.xpose.msra.mxu1 %v833_v24 }
 0x15c   :  { %660 = vmatmul.mubr.f32.vlgmr.msra.gmra.mxu1 %v282_v58 }
 0x15d   :  { %737 = shalt.err (!%p734_p0)
}
 0x15e   :  { %445 = dma.vmem_to_hbm [thread:$0]  %s440_s7, 1024, %s876_s4, [#allocation4], %s775_s21, %s775_s21, %s776_s22  }
 0x15f   :  { %s781_s11 = smov [#allocation8]  }
 0x160   :  { %s452_s3 = sshll.u32 %s781_s11, 4  ;;  %s453_s3 = int_to_ptr.vmem [resolvable:$true] %s452_s3 }
 0x161   :  { %s746_s12 = scalar_lea.vmem %s453_s3, 16  ;;  %s750_s13 = scalar_lea.vmem %s453_s3, 32 }
 0x162   :  { %p747_p1 = scmp.ne.s32.totalorder %s453_s3, %s746_s12  ;;  %p751_p2 = scmp.lt.s32.totalorder %s453_s3, %s453_s3 }
 0x163   :  { %p752_p3 = scmp.lt.s32.totalorder %s750_s13, %s746_s12 }
 0x165   :  { %p753_p4 = por %p752_p3, %p751_p2 }
 0x167   :  { %p754_p5 = pnand %p753_p4, %p747_p1 }
 0x21c   :  { %v349_v59 = vpop.f32.mrf.mxu1 }
 0x21d   :  { %353 = vst [vmem:[#allocation8] sm:$0x1] %v349_v59 }
 0x21e   :  { %v661_v60 = vpop.f32.mrf.mxu1 }
 0x21f   :  { %757 = shalt.err (!%p754_p5)
}
 0x220   :  { %455 = dma.vmem_to_hbm [thread:$0]  %s453_s3, 16, %s877_s5, [#allocation9]  }
 0x221   :  { %770 = dma.done.wait [#allocation4], 1024  }
 0x222   :  { %771 = vsyncadd [#allocation4], 4294966272 }
 0x223   :  { %772 = dma.done.wait [#allocation9], 16  }
 0x224   :  { %773 = vsyncadd [#allocation9], 4294967280 }
 0x225   :  { %462 = vsyncpa [#allocation3], 1 }
 0x226   :  { %463 = vsyncpa [#allocation6], 1 }
 0x227   :  { %464 = vsyncpa [#allocation4], 1 }
 0x228   :  { %465 = vsyncpa [#allocation9], 1 }

</bundles_post_ra>
